<compile_context>
chip_gen: v6e
topology: v6e:2x2x1
jax: 0.10.0
libtpu: 0.0.40
codegen_flags: <defaults>
</compile_context>

<pallas_src>
import functools

import jax
import jax.numpy as jnp
from jax.experimental import pallas as pl
from jax.experimental.pallas import tpu as pltpu


def _round_up(x: int, m: int) -> int:
    return (x + m - 1) // m * m


def _pick_tile_d(d_pad: int, n1: int, n2: int, in_itemsize: int) -> int:
    """Largest lane tile in {512,384,256,128} dividing d_pad that fits VMEM."""
    budget = 40 * 1024 * 1024  # conservative, safe on v5e/v6e/v7x
    for t in (512, 384, 256, 128):
        if d_pad % t:
            continue
        need = (
            2 * 2 * (n1 + n2) * t * in_itemsize   # double-buffered inputs
            + 8 * max(n1, n2) * t * 4             # f32 temporaries (x, sx, p, ...)
            + 2 * 8 * t * 4                       # double-buffered output rows
        )
        if need <= budget:
            return t
    return 128


def _cmd_tile_kernel(x1_ref, x2_ref, out_ref, *, n_moments: int):
    """One D tile: write per-feature squared moment differences (one row per moment)."""
    x1 = x1_ref[...].astype(jnp.float32)   # [N1, T]
    x2 = x2_ref[...].astype(jnp.float32)   # [N2, T]

    mx1 = jnp.mean(x1, axis=0, keepdims=True)   # [1, T]
    mx2 = jnp.mean(x2, axis=0, keepdims=True)   # [1, T]
    dm = mx1 - mx2
    out_ref[0:1, :] = dm * dm                   # first-moment term (pre-sqrt)

    sx1 = x1 - mx1
    sx2 = x2 - mx2
    p1 = sx1                                    # running powers: p = sx^k
    p2 = sx2
    for i in range(n_moments - 1):              # static unroll, k = i + 2
        p1 = p1 * sx1
        p2 = p2 * sx2
        ss1 = jnp.mean(p1, axis=0, keepdims=True)
        ss2 = jnp.mean(p2, axis=0, keepdims=True)
        dd = ss1 - ss2
        out_ref[i + 1:i + 2, :] = dd * dd

    # Zero the padded moment rows (output rows are padded to a multiple of 8).
    m_rows = out_ref.shape[0]
    if m_rows > n_moments:
        out_ref[n_moments:m_rows, :] = jnp.zeros(
            (m_rows - n_moments, out_ref.shape[1]), jnp.float32
        )


def cmd(x1: jax.Array, x2: jax.Array, n_moments: int, *, tile_d: int | None = None) -> jax.Array:
    """Pallas implementation of CMD.forward(x1, x2, n_moments) -> scalar."""
    assert x1.ndim == 2 and x2.ndim == 2 and x1.shape[1] == x2.shape[1]
    n1, d = x1.shape
    n2, _ = x2.shape
    in_itemsize = max(jnp.dtype(x1.dtype).itemsize, jnp.dtype(x2.dtype).itemsize)

    d_pad = _round_up(d, 128)
    if tile_d is None:
        tile_d = _pick_tile_d(d_pad, n1, n2, in_itemsize)
    assert tile_d % 128 == 0
    d_pad = _round_up(d_pad, tile_d)

    # Zero-padding along D is exact: padded columns give mx1 == mx2 == 0 and
    # sx == 0, so every per-moment difference there is exactly 0.
    if d_pad != d:
        x1 = jnp.pad(x1, ((0, 0), (0, d_pad - d)))
        x2 = jnp.pad(x2, ((0, 0), (0, d_pad - d)))

    num_blocks = d_pad // tile_d
    m_rows = _round_up(max(n_moments, 1), 8)    # (8,128)-aligned output block

    # VMEM budget / cost hints (streaming, HBM-bound kernel).
    needed = (
        2 * 2 * (n1 + n2) * tile_d * in_itemsize
        + 8 * max(n1, n2) * tile_d * 4
        + 2 * m_rows * tile_d * 4
    )
    vmem_limit = int(min(max(2 * needed, 32 * 1024 * 1024), 60 * 1024 * 1024))
    cost = pl.CostEstimate(
        flops=int((n1 + n2) * d_pad * (3 + 3 * max(n_moments - 1, 0))),
        transcendentals=0,
        bytes_accessed=int((n1 + n2) * d_pad * in_itemsize + m_rows * d_pad * 4),
    )

    kernel = functools.partial(_cmd_tile_kernel, n_moments=n_moments)
    partial = pl.pallas_call(
        kernel,
        out_shape=jax.ShapeDtypeStruct((m_rows, d_pad), jnp.float32),
        grid=(num_blocks,),
        in_specs=[
            pl.BlockSpec((n1, tile_d), lambda i: (0, i)),
            pl.BlockSpec((n2, tile_d), lambda i: (0, i)),
        ],
        out_specs=pl.BlockSpec((m_rows, tile_d), lambda i: (0, i)),
        compiler_params=pltpu.CompilerParams(
            dimension_semantics=("parallel",),
            vmem_limit_bytes=vmem_limit,
        ),
        cost_estimate=cost,
    )(x1, x2)

    # Epilogue (negligible): sum squared differences over D, sqrt per moment,
    # sum over moments.  sqrt must happen only after the full D reduction.
    per_moment = jnp.sum(partial[:n_moments, :], axis=1)
    return jnp.sum(jnp.sqrt(per_moment))


def _cmd_reference(x1, x2, n_moments):
    """Pure-JAX reference mirroring the PyTorch module."""
    x1 = x1.astype(jnp.float32)
    x2 = x2.astype(jnp.float32)
    mx1 = jnp.mean(x1, 0)
    mx2 = jnp.mean(x2, 0)
    sx1 = x1 - mx1
    sx2 = x2 - mx2
    scms = jnp.sqrt(jnp.sum((mx1 - mx2) ** 2))
    for i in range(n_moments - 1):
        k = i + 2
        ss1 = jnp.mean(sx1 ** k, 0)
        ss2 = jnp.mean(sx2 ** k, 0)
        scms = scms + jnp.sqrt(jnp.sum((ss1 - ss2) ** 2))
    return scms


if __name__ == "__main__":
    key = jax.random.PRNGKey(0)
    k1, k2, k3, k4 = jax.random.split(key, 4)

    # Case 1: small shapes consistent with a hidden-feature regularizer
    # (batch=8, hidden=32), D padded 32 -> 128, single-tile grid.
    n_moments = 5
    x1 = jax.random.normal(k1, (8, 32), dtype=jnp.float32)
    x2 = jax.random.normal(k2, (8, 32), dtype=jnp.float32) * 1.5 + 0.3
    out = jax.block_until_ready(cmd(x1, x2, n_moments))
    ref = _cmd_reference(x1, x2, n_moments)
    assert jnp.allclose(out, ref, rtol=1e-5, atol=1e-5), (out, ref)

    # Case 2: multi-tile D grid (D=384, forced 128-lane tiles -> 3 grid steps),
    # different batch sizes for the two domains.
    y1 = jax.random.normal(k3, (16, 384), dtype=jnp.float32)
    y2 = jax.random.normal(k4, (12, 384), dtype=jnp.float32) * 0.8 - 0.1
    out2 = jax.block_until_ready(cmd(y1, y2, 3, tile_d=128))
    ref2 = _cmd_reference(y1, y2, 3)
    assert jnp.allclose(out2, ref2, rtol=1e-5, atol=1e-5), (out2, ref2)

    print("KERNEL_OK")
</pallas_src>

<mosaic_0001>
module attributes {stable_mosaic.version = 11 : i64} {
  func.func @_cmd_tile_kernel(%arg0: i32, %arg1: memref<8x128xf32, #tpu.memory_space<vmem>>, %arg2: memref<8x128xf32, #tpu.memory_space<vmem>>, %arg3: memref<8x128xf32, #tpu.memory_space<vmem>>) attributes {dimension_semantics = [#tpu.dimension_semantics<parallel>], iteration_bounds = array<i64: 1>, scalar_prefetch = 0 : i64, scratch_operands = 0 : i64, tpu.core_type = #tpu.core_type<tc>, window_params = [{transform_indices = @transform_0, window_bounds = array<i64: 8, 128>}, {transform_indices = @transform_1, window_bounds = array<i64: 8, 128>}, {transform_indices = @transform_2, window_bounds = array<i64: 8, 128>}]} {
    %c0 = arith.constant 0 : index
    %c0_0 = arith.constant 0 : index
    %0 = vector.load %arg1[%c0, %c0_0] : memref<8x128xf32, #tpu.memory_space<vmem>>, vector<8x128xf32>
    %c0_1 = arith.constant 0 : index
    %c0_2 = arith.constant 0 : index
    %1 = vector.load %arg2[%c0_1, %c0_2] : memref<8x128xf32, #tpu.memory_space<vmem>>, vector<8x128xf32>
    %cst = arith.constant dense<0.000000e+00> : vector<128xf32>
    %2 = vector.multi_reduction <add>, %0, %cst [0] : vector<8x128xf32> to vector<128xf32>
    %3 = vector.shape_cast %2 : vector<128xf32> to vector<1x128xf32>
    %cst_3 = arith.constant 8.000000e+00 : f32
    %4 = vector.broadcast %cst_3 : f32 to vector<1x128xf32>
    %5 = arith.divf %3, %4 : vector<1x128xf32>
    %cst_4 = arith.constant dense<0.000000e+00> : vector<128xf32>
    %6 = vector.multi_reduction <add>, %1, %cst_4 [0] : vector<8x128xf32> to vector<128xf32>
    %7 = vector.shape_cast %6 : vector<128xf32> to vector<1x128xf32>
    %cst_5 = arith.constant 8.000000e+00 : f32
    %8 = vector.broadcast %cst_5 : f32 to vector<1x128xf32>
    %9 = arith.divf %7, %8 : vector<1x128xf32>
    %10 = arith.subf %5, %9 : vector<1x128xf32>
    %11 = arith.mulf %10, %10 : vector<1x128xf32>
    %c0_6 = arith.constant 0 : index
    %c0_7 = arith.constant 0 : index
    %12 = vector.load %arg3[%c0_6, %c0_7] : memref<8x128xf32, #tpu.memory_space<vmem>>, vector<1x128xf32>
    tpu.vector_store %arg3[%c0_6, %c0_7], %11 {strides = array<i32>} : memref<8x128xf32, #tpu.memory_space<vmem>>, vector<1x128xf32>,
    %13 = vector.broadcast %5 : vector<1x128xf32> to vector<8x128xf32>
    %14 = arith.subf %0, %13 : vector<8x128xf32>
    %15 = vector.broadcast %9 : vector<1x128xf32> to vector<8x128xf32>
    %16 = arith.subf %1, %15 : vector<8x128xf32>
    %17 = arith.mulf %14, %14 : vector<8x128xf32>
    %18 = arith.mulf %16, %16 : vector<8x128xf32>
    %cst_8 = arith.constant dense<0.000000e+00> : vector<128xf32>
    %19 = vector.multi_reduction <add>, %17, %cst_8 [0] : vector<8x128xf32> to vector<128xf32>
    %20 = vector.shape_cast %19 : vector<128xf32> to vector<1x128xf32>
    %cst_9 = arith.constant 8.000000e+00 : f32
    %21 = vector.broadcast %cst_9 : f32 to vector<1x128xf32>
    %22 = arith.divf %20, %21 : vector<1x128xf32>
    %cst_10 = arith.constant dense<0.000000e+00> : vector<128xf32>
    %23 = vector.multi_reduction <add>, %18, %cst_10 [0] : vector<8x128xf32> to vector<128xf32>
    %24 = vector.shape_cast %23 : vector<128xf32> to vector<1x128xf32>
    %cst_11 = arith.constant 8.000000e+00 : f32
    %25 = vector.broadcast %cst_11 : f32 to vector<1x128xf32>
    %26 = arith.divf %24, %25 : vector<1x128xf32>
    %27 = arith.subf %22, %26 : vector<1x128xf32>
    %28 = arith.mulf %27, %27 : vector<1x128xf32>
    %c1 = arith.constant 1 : index
    %c0_12 = arith.constant 0 : index
    %29 = vector.load %arg3[%c1, %c0_12] : memref<8x128xf32, #tpu.memory_space<vmem>>, vector<1x128xf32>
    tpu.vector_store %arg3[%c1, %c0_12], %28 {strides = array<i32>} : memref<8x128xf32, #tpu.memory_space<vmem>>, vector<1x128xf32>,
    %30 = arith.mulf %17, %14 : vector<8x128xf32>
    %31 = arith.mulf %18, %16 : vector<8x128xf32>
    %cst_13 = arith.constant dense<0.000000e+00> : vector<128xf32>
    %32 = vector.multi_reduction <add>, %30, %cst_13 [0] : vector<8x128xf32> to vector<128xf32>
    %33 = vector.shape_cast %32 : vector<128xf32> to vector<1x128xf32>
    %cst_14 = arith.constant 8.000000e+00 : f32
    %34 = vector.broadcast %cst_14 : f32 to vector<1x128xf32>
    %35 = arith.divf %33, %34 : vector<1x128xf32>
    %cst_15 = arith.constant dense<0.000000e+00> : vector<128xf32>
    %36 = vector.multi_reduction <add>, %31, %cst_15 [0] : vector<8x128xf32> to vector<128xf32>
    %37 = vector.shape_cast %36 : vector<128xf32> to vector<1x128xf32>
    %cst_16 = arith.constant 8.000000e+00 : f32
    %38 = vector.broadcast %cst_16 : f32 to vector<1x128xf32>
    %39 = arith.divf %37, %38 : vector<1x128xf32>
    %40 = arith.subf %35, %39 : vector<1x128xf32>
    %41 = arith.mulf %40, %40 : vector<1x128xf32>
    %c2 = arith.constant 2 : index
    %c0_17 = arith.constant 0 : index
    %42 = vector.load %arg3[%c2, %c0_17] : memref<8x128xf32, #tpu.memory_space<vmem>>, vector<1x128xf32>
    tpu.vector_store %arg3[%c2, %c0_17], %41 {strides = array<i32>} : memref<8x128xf32, #tpu.memory_space<vmem>>, vector<1x128xf32>,
    %43 = arith.mulf %30, %14 : vector<8x128xf32>
    %44 = arith.mulf %31, %16 : vector<8x128xf32>
    %cst_18 = arith.constant dense<0.000000e+00> : vector<128xf32>
    %45 = vector.multi_reduction <add>, %43, %cst_18 [0] : vector<8x128xf32> to vector<128xf32>
    %46 = vector.shape_cast %45 : vector<128xf32> to vector<1x128xf32>
    %cst_19 = arith.constant 8.000000e+00 : f32
    %47 = vector.broadcast %cst_19 : f32 to vector<1x128xf32>
    %48 = arith.divf %46, %47 : vector<1x128xf32>
    %cst_20 = arith.constant dense<0.000000e+00> : vector<128xf32>
    %49 = vector.multi_reduction <add>, %44, %cst_20 [0] : vector<8x128xf32> to vector<128xf32>
    %50 = vector.shape_cast %49 : vector<128xf32> to vector<1x128xf32>
    %cst_21 = arith.constant 8.000000e+00 : f32
    %51 = vector.broadcast %cst_21 : f32 to vector<1x128xf32>
    %52 = arith.divf %50, %51 : vector<1x128xf32>
    %53 = arith.subf %48, %52 : vector<1x128xf32>
    %54 = arith.mulf %53, %53 : vector<1x128xf32>
    %c3 = arith.constant 3 : index
    %c0_22 = arith.constant 0 : index
    %55 = vector.load %arg3[%c3, %c0_22] : memref<8x128xf32, #tpu.memory_space<vmem>>, vector<1x128xf32>
    tpu.vector_store %arg3[%c3, %c0_22], %54 {strides = array<i32>} : memref<8x128xf32, #tpu.memory_space<vmem>>, vector<1x128xf32>,
    %56 = arith.mulf %43, %14 : vector<8x128xf32>
    %57 = arith.mulf %44, %16 : vector<8x128xf32>
    %cst_23 = arith.constant dense<0.000000e+00> : vector<128xf32>
    %58 = vector.multi_reduction <add>, %56, %cst_23 [0] : vector<8x128xf32> to vector<128xf32>
    %59 = vector.shape_cast %58 : vector<128xf32> to vector<1x128xf32>
    %cst_24 = arith.constant 8.000000e+00 : f32
    %60 = vector.broadcast %cst_24 : f32 to vector<1x128xf32>
    %61 = arith.divf %59, %60 : vector<1x128xf32>
    %cst_25 = arith.constant dense<0.000000e+00> : vector<128xf32>
    %62 = vector.multi_reduction <add>, %57, %cst_25 [0] : vector<8x128xf32> to vector<128xf32>
    %63 = vector.shape_cast %62 : vector<128xf32> to vector<1x128xf32>
    %cst_26 = arith.constant 8.000000e+00 : f32
    %64 = vector.broadcast %cst_26 : f32 to vector<1x128xf32>
    %65 = arith.divf %63, %64 : vector<1x128xf32>
    %66 = arith.subf %61, %65 : vector<1x128xf32>
    %67 = arith.mulf %66, %66 : vector<1x128xf32>
    %c4 = arith.constant 4 : index
    %c0_27 = arith.constant 0 : index
    %68 = vector.load %arg3[%c4, %c0_27] : memref<8x128xf32, #tpu.memory_space<vmem>>, vector<1x128xf32>
    tpu.vector_store %arg3[%c4, %c0_27], %67 {strides = array<i32>} : memref<8x128xf32, #tpu.memory_space<vmem>>, vector<1x128xf32>,
    %cst_28 = arith.constant 0.000000e+00 : f32
    %69 = vector.broadcast %cst_28 : f32 to vector<3x128xf32>
    %c5 = arith.constant 5 : index
    %c0_29 = arith.constant 0 : index
    %70 = vector.load %arg3[%c5, %c0_29] : memref<8x128xf32, #tpu.memory_space<vmem>>, vector<3x128xf32>
    tpu.vector_store %arg3[%c5, %c0_29], %69 {strides = array<i32>} : memref<8x128xf32, #tpu.memory_space<vmem>>, vector<3x128xf32>,
    return
  }
  func.func @transform_0(%arg0: i32) -> (i32, i32) {
    %c0_i32 = arith.constant 0 : i32
    %c0_i32_0 = arith.constant 0 : i32
    return %c0_i32, %arg0 : i32, i32
  }
  func.func @transform_1(%arg0: i32) -> (i32, i32) {
    %c0_i32 = arith.constant 0 : i32
    %c0_i32_0 = arith.constant 0 : i32
    return %c0_i32, %arg0 : i32, i32
  }
  func.func @transform_2(%arg0: i32) -> (i32, i32) {
    %c0_i32 = arith.constant 0 : i32
    %c0_i32_0 = arith.constant 0 : i32
    return %c0_i32, %arg0 : i32, i32
  }
}

</mosaic_0001>

<bundles_post_ra>
// kernel: tpu_custom_call.1
= control target key start
LH: loop header
LB: loop body
LE: loop exit
PB: predicated region body
PF: predicated region fallthrough
CT: control target
= control target key end

     0   :  { %7 = vsyncpa [#allocation3], 0  ;;  %s249_s0 = inlined_call_operand.hbm [shape: f32[8,128], index: 0, kind: input, shape index: {}]   ;;  %s250_s1 = inlined_call_operand.hbm [shape: f32[8,128], index: 1, kind: input, shape index: {}]   ;;  %s251_s2 = inlined_call_operand.hbm [shape: f32[8,128], index: 2, kind: output, shape index: {}]  }
   0x1   :  { %8 = vsyncpa [#allocation6], 0 }
   0x2   :  { %9 = vsyncpa [#allocation4], 0  ;;  %s221_s9 = smov [#allocation2]   ;;  %s222_s11 = smov [#allocation5]  }
   0x3   :  { %s16_s10 = sshll.u32 %s221_s9, 4  ;;  %s26_s12 = sshll.u32 %s222_s11, 4  ;;  %s17_s10 = int_to_ptr.vmem [resolvable:$true] %s16_s10  ;;  %s27_s12 = int_to_ptr.vmem [resolvable:$true] %s26_s12 }
   0x4   :  { %s163_s13 = scalar_lea.vmem %s17_s10, 128  ;;  %p168_p1 = scmp.lt.s32.totalorder %s17_s10, %s17_s10 }
   0x5   :  { %p164_p0 = scmp.ne.s32.totalorder %s17_s10, %s163_s13  ;;  %p169_p2 = scmp.lt.s32.totalorder %s163_s13, %s163_s13 }
   0x7   :  { %p170_p3 = por %p169_p2, %p168_p1 }
   0x9   :  { %p171_p4 = pnand %p170_p3, %p164_p0 }
   0xb   :  { %174 = shalt.err (!%p171_p4)
}
   0xc   :  { %19 = dma.hbm_to_vmem [thread:$0]  %s249_s0, 128, %s17_s10, [#allocation3]  }
   0xd   :  { %s183_s16 = scalar_lea.vmem %s27_s12, 128  ;;  %p188_p6 = scmp.lt.s32.totalorder %s27_s12, %s27_s12 }
   0xe   :  { %p184_p5 = scmp.ne.s32.totalorder %s27_s12, %s183_s16  ;;  %p189_p7 = scmp.lt.s32.totalorder %s183_s16, %s183_s16 }
  0x10   :  { %p190_p8 = por %p189_p7, %p188_p6 }
  0x12   :  { %p191_p9 = pnand %p190_p8, %p184_p5 }
  0x14   :  { %194 = shalt.err (!%p191_p9)
}
  0x15   :  { %29 = dma.hbm_to_vmem [thread:$0]  %s250_s1, 128, %s27_s12, [#allocation6]  }
  0x16   :  { %215 = dma.done.wait [#allocation3], 128  }
  0x17   :  { %216 = vsyncadd [#allocation3], 4294967168 }
  0x18   :  { %217 = dma.done.wait [#allocation6], 128  }
  0x19   :  { %218 = vsyncadd [#allocation6], 4294967168  ;;  %v223_v0 = vmov 0.0   ;;  %v36_v1 = vld [vmem:[#allocation2] sm:$0xff]  ;;  %v37_v2 = vld [vmem:[#allocation5] sm:$0xff]  ;;  %s224_s0 = smov [#allocation7]  }
  0x1a   :  { %134 = vst [vmem:[#allocation7 + $0x5] sm:$0x7] %v223_v0  ;;  %v38_v3 = vrot.slane %v36_v1, 4  ;;  %v46_v4 = vrot.slane %v37_v2, 4  ;;  %s141_s1 = sshll.u32 %s224_s0, 4  ;;  %s142_s1 = int_to_ptr.vmem [resolvable:$true] %s141_s1 }
  0x1b   :  { %s195_s19 = scalar_lea.vmem %s142_s1, 128  ;;  %p200_p11 = scmp.lt.s32.totalorder %s142_s1, %s142_s1 }
  0x1c   :  { %v39_v5 = vadd.f32 %v38_v3, %v36_v1  ;;  %v47_v6 = vadd.f32 %v46_v4, %v37_v2  ;;  %p196_p10 = scmp.ne.s32.totalorder %s142_s1, %s195_s19  ;;  %p201_p12 = scmp.lt.s32.totalorder %s195_s19, %s195_s19 }
  0x1e   :  { %v40_v7 = vrot.slane %v39_v5, 2  ;;  %v48_v8 = vrot.slane %v47_v6, 2  ;;  %p202_p13 = por %p201_p12, %p200_p11 }
  0x20   :  { %v41_v9 = vadd.f32 %v40_v7, %v39_v5  ;;  %v49_v10 = vadd.f32 %v48_v8, %v47_v6  ;;  %p203_p0 = pnand %p202_p13, %p196_p10 }
  0x22   :  { %v42_v11 = vrot.slane %v41_v9, 1  ;;  %v50_v12 = vrot.slane %v49_v10, 1 }
  0x24   :  { %v43_v13 = vadd.f32 %v42_v11, %v41_v9  ;;  %v51_v14 = vadd.f32 %v50_v12, %v49_v10 }
  0x26   :  { %v45_v15 = vmul.f32 0.125, %v43_v13  ;;  %v52_v16 = vmul.f32 0.125, %v51_v14 }
  0x28   :  { %v53_v17 = vsub.f32 %v45_v15, %v52_v16  ;;  %v56_v18 = vsub.f32 %v36_v1, %v45_v15  ;;  %v57_v19 = vsub.f32 %v37_v2, %v52_v16 }
  0x2a   :  { %v54_v20 = vmul.f32 %v53_v17, %v53_v17  ;;  %v58_v21 = vmul.f32 %v56_v18, %v56_v18  ;;  %v59_v22 = vmul.f32 %v57_v19, %v57_v19 }
  0x2c   :  { %55 = vst [vmem:[#allocation7] sm:$0x1] %v54_v20  ;;  %v60_v23 = vrot.slane %v58_v21, 4  ;;  %v67_v24 = vrot.slane %v59_v22, 4  ;;  %v77_v25 = vmul.f32 %v58_v21, %v56_v18  ;;  %v78_v26 = vmul.f32 %v59_v22, %v57_v19 }
  0x2e   :  { %v61_v27 = vadd.f32 %v60_v23, %v58_v21  ;;  %v68_v28 = vadd.f32 %v67_v24, %v59_v22  ;;  %v79_v29 = vrot.slane %v77_v25, 4  ;;  %v86_v30 = vrot.slane %v78_v26, 4 }
  0x2f   :  { %v96_v31 = vmul.f32 %v77_v25, %v56_v18  ;;  %v97_v32 = vmul.f32 %v78_v26, %v57_v19 }
  0x30   :  { %v62_v33 = vrot.slane %v61_v27, 2  ;;  %v69_v34 = vrot.slane %v68_v28, 2  ;;  %v80_v35 = vadd.f32 %v79_v29, %v77_v25  ;;  %v87_v36 = vadd.f32 %v86_v30, %v78_v26 }
  0x31   :  { %v98_v37 = vrot.slane %v96_v31, 4  ;;  %v105_v38 = vrot.slane %v97_v32, 4  ;;  %v115_v39 = vmul.f32 %v96_v31, %v56_v18  ;;  %v116_v40 = vmul.f32 %v97_v32, %v57_v19 }
  0x32   :  { %v63_v41 = vadd.f32 %v62_v33, %v61_v27  ;;  %v70_v42 = vadd.f32 %v69_v34, %v68_v28  ;;  %v81_v43 = vrot.slane %v80_v35, 2  ;;  %v88_v44 = vrot.slane %v87_v36, 2 }
  0x33   :  { %v99_v45 = vadd.f32 %v98_v37, %v96_v31  ;;  %v106_v46 = vadd.f32 %v105_v38, %v97_v32  ;;  %v117_v47 = vrot.slane %v115_v39, 4  ;;  %v124_v48 = vrot.slane %v116_v40, 4 }
  0x34   :  { %v64_v49 = vrot.slane %v63_v41, 1  ;;  %v71_v50 = vrot.slane %v70_v42, 1  ;;  %v82_v51 = vadd.f32 %v81_v43, %v80_v35  ;;  %v89_v52 = vadd.f32 %v88_v44, %v87_v36 }
  0x35   :  { %v100_v53 = vrot.slane %v99_v45, 2  ;;  %v107_v54 = vrot.slane %v106_v46, 2  ;;  %v118_v55 = vadd.f32 %v117_v47, %v115_v39  ;;  %v125_v56 = vadd.f32 %v124_v48, %v116_v40 }
  0x36   :  { %v65_v57 = vadd.f32 %v64_v49, %v63_v41  ;;  %v72_v58 = vadd.f32 %v71_v50, %v70_v42  ;;  %v83_v59 = vrot.slane %v82_v51, 1  ;;  %v90_v60 = vrot.slane %v89_v52, 1 }
  0x37   :  { %v101_v61 = vadd.f32 %v100_v53, %v99_v45  ;;  %v108_v62 = vadd.f32 %v107_v54, %v106_v46  ;;  %v119_v63 = vrot.slane %v118_v55, 2  ;;  %v126_v0 = vrot.slane %v125_v56, 2 }
  0x38   :  { %v66_v1 = vmul.f32 0.125, %v65_v57  ;;  %v73_v2 = vmul.f32 0.125, %v72_v58  ;;  %v84_v3 = vadd.f32 %v83_v59, %v82_v51  ;;  %v91_v4 = vadd.f32 %v90_v60, %v89_v52 }
  0x39   :  { %v102_v5 = vrot.slane %v101_v61, 1  ;;  %v109_v6 = vrot.slane %v108_v62, 1  ;;  %v120_v7 = vadd.f32 %v119_v63, %v118_v55  ;;  %v127_v8 = vadd.f32 %v126_v0, %v125_v56 }
  0x3a   :  { %v74_v9 = vsub.f32 %v66_v1, %v73_v2  ;;  %v85_v10 = vmul.f32 0.125, %v84_v3  ;;  %v92_v11 = vmul.f32 0.125, %v91_v4 }
  0x3b   :  { %v103_v12 = vadd.f32 %v102_v5, %v101_v61  ;;  %v110_v13 = vadd.f32 %v109_v6, %v108_v62  ;;  %v121_v14 = vrot.slane %v120_v7, 1  ;;  %v128_v15 = vrot.slane %v127_v8, 1 }
  0x3c   :  { %v75_v16 = vmul.f32 %v74_v9, %v74_v9  ;;  %v93_v17 = vsub.f32 %v85_v10, %v92_v11 }
  0x3d   :  { %v104_v18 = vmul.f32 0.125, %v103_v12  ;;  %v111_v19 = vmul.f32 0.125, %v110_v13  ;;  %v122_v20 = vadd.f32 %v121_v14, %v120_v7  ;;  %v129_v21 = vadd.f32 %v128_v15, %v127_v8 }
  0x3e   :  { %76 = vst [vmem:[#allocation7 + $0x1] sm:$0x1] %v75_v16  ;;  %v94_v22 = vmul.f32 %v93_v17, %v93_v17 }
  0x3f   :  { %v112_v23 = vsub.f32 %v104_v18, %v111_v19  ;;  %v123_v24 = vmul.f32 0.125, %v122_v20  ;;  %v130_v25 = vmul.f32 0.125, %v129_v21 }
  0x40   :  { %95 = vst [vmem:[#allocation7 + $0x2] sm:$0x1] %v94_v22 }
  0x41   :  { %v113_v26 = vmul.f32 %v112_v23, %v112_v23  ;;  %v131_v27 = vsub.f32 %v123_v24, %v130_v25 }
  0x43   :  { %114 = vst [vmem:[#allocation7 + $0x3] sm:$0x1] %v113_v26  ;;  %v132_v28 = vmul.f32 %v131_v27, %v131_v27 }
  0x45   :  { %133 = vst [vmem:[#allocation7 + $0x4] sm:$0x1] %v132_v28 }
  0x46   :  { %206 = shalt.err (!%p203_p0)
}
  0x47   :  { %144 = dma.vmem_to_hbm [thread:$0]  %s142_s1, 128, %s251_s2, [#allocation4]  }
  0x48   :  { %219 = dma.done.wait [#allocation4], 128  }
  0x49   :  { %220 = vsyncadd [#allocation4], 4294967168 }
  0x4a   :  { %148 = vsyncpa [#allocation3], 1 }
  0x4b   :  { %149 = vsyncpa [#allocation6], 1 }
  0x4c   :  { %150 = vsyncpa [#allocation4], 1 }

</bundles_post_ra>
